<compile_context>
chip_gen: v5e
topology: v5e:2x2
jax: 0.10.0
libtpu: 0.0.40
codegen_flags: <defaults>
</compile_context>

<pallas_src>
import functools

import jax
import jax.numpy as jnp
import numpy as np
from jax.experimental import pallas as pl
from jax.experimental.pallas import tpu as pltpu


# ---------------------------------------------------------------------------
# Pallas kernel: fused forward+backward GRU recurrence for one layer,
# one time-chunk per grid step, hidden state carried in VMEM scratch.
# ---------------------------------------------------------------------------
def _bigru_layer_kernel(xproj_ref, h0_ref, whrz_ref, whs_ref, out_ref, h_scr, *, unroll):
    """xproj_ref: (chunk, B, 6*n_h)  precomputed x-projections, layout
                    [xr_f | xr_b | xz_f | xz_b | xs_f | xs_b] (biases folded in)
       h0_ref   : (B, 2*n_h)         initial hidden state [h_f | h_b]
       whrz_ref : (2*n_h, 4*n_h)     block-diag hidden weights for fused [reset|update]
       whs_ref  : (2*n_h, 2*n_h)     block-diag hidden weights for the state gate
       out_ref  : (chunk, B, 2*n_h)  per-timestep hidden states [h_f | h_b]
       h_scr    : (B, 2*n_h) f32     hidden state carried across time chunks
    """
    chunk = xproj_ref.shape[0]
    two_nh = out_ref.shape[-1]
    four_nh = 2 * two_nh

    @pl.when(pl.program_id(0) == 0)
    def _():
        h_scr[...] = h0_ref[...].astype(jnp.float32)

    cdtype = whrz_ref.dtype          # bf16 in mxu-bf16 mode, else f32
    whrz = whrz_ref[...]             # loop-invariant loads, hoisted out of the loop
    whs = whs_ref[...]
    # NOTE: a further v6e/v7x step would keep whrz/whs resident in the two MXUs via
    # pltpu.matmul_push_rhs(..., mxu_index=0/1) + matmul_acc_lhs/matmul_pop per step.

    def step(t, h):
        xp = xproj_ref[t]                                                # (B, 6*n_h)
        hrz = jnp.dot(h.astype(cdtype), whrz,
                      preferred_element_type=jnp.float32)                # (B, 4*n_h)
        # One fused sigmoid over [r_f r_b z_f z_b] for both directions.
        rz = jax.nn.sigmoid(xp[:, :four_nh] + hrz)
        r = rz[:, :two_nh]                                               # [r_f | r_b]
        z = rz[:, two_nh:]                                               # [z_f | z_b]
        hs = jnp.dot((r * h).astype(cdtype), whs,
                     preferred_element_type=jnp.float32)                 # (B, 2*n_h)
        s = jnp.tanh(xp[:, four_nh:] + hs)
        h_new = z * h + (1.0 - z) * s
        out_ref[t] = h_new.astype(out_ref.dtype)
        return h_new

    h_scr[...] = jax.lax.fori_loop(0, chunk, step, h_scr[...], unroll=unroll)


def _bigru_layer(xproj, h0, whrz_blk, whs_blk, *, time_chunk=64, unroll=8):
    """Run one BiGRU layer (both directions fused).

    xproj: (T, B, 6*n_h), h0: (B, 2*n_h), whrz_blk: (2*n_h, 4*n_h), whs_blk: (2*n_h, 2*n_h)
    Returns (T, B, 2*n_h) with layout [h_fwd | h_bwd]."""
    T, B, six_nh = xproj.shape
    n_h = six_nh // 6

    # Largest divisor of T that is <= time_chunk; cap unroll to a divisor of chunk.
    chunk = min(T, time_chunk)
    while T % chunk:
        chunk -= 1
    unroll = max(1, min(unroll, chunk))
    while chunk % unroll:
        unroll -= 1
    n_chunks = T // chunk

    # Explicit VMEM budget (2x buffered xproj/out blocks + weights + h0 + scratch).
    w_itemsize = jnp.dtype(whrz_blk.dtype).itemsize
    xb = chunk * B * 6 * n_h * 4
    ob = chunk * B * 2 * n_h * 4
    wb = (2 * n_h * 4 * n_h + 2 * n_h * 2 * n_h) * w_itemsize
    hb = B * 2 * n_h * 4
    need = 2 * xb + 2 * ob + 2 * wb + 2 * hb + hb
    vmem_limit = int(min(max(2 * need, 16 * 1024 * 1024), 48 * 1024 * 1024))

    # The recurrence looks tiny to XLA's scheduler but is serially long.
    cost = pl.CostEstimate(
        flops=int(24 * T * B * n_h * n_h),          # two block-diag matmuls per step
        transcendentals=int(6 * T * B * n_h),       # sigmoid(4*n_h) + tanh(2*n_h)
        bytes_accessed=int(T * B * 6 * n_h * 4 + T * B * 2 * n_h * 4
                           + (2 * n_h * 4 * n_h + 2 * n_h * 2 * n_h) * w_itemsize
                           + B * 2 * n_h * 4),
    )

    kernel = functools.partial(_bigru_layer_kernel, unroll=unroll)
    return pl.pallas_call(
        kernel,
        out_shape=jax.ShapeDtypeStruct((T, B, 2 * n_h), jnp.float32),
        grid_spec=pltpu.PrefetchScalarGridSpec(
            num_scalar_prefetch=0,
            grid=(n_chunks,),  # time chunks; h carried across chunks in VMEM scratch
            in_specs=[
                pl.BlockSpec((chunk, B, 6 * n_h), lambda c: (c, 0, 0)),
                pl.BlockSpec((B, 2 * n_h), lambda c: (0, 0)),
                pl.BlockSpec((2 * n_h, 4 * n_h), lambda c: (0, 0)),
                pl.BlockSpec((2 * n_h, 2 * n_h), lambda c: (0, 0)),
            ],
            out_specs=pl.BlockSpec((chunk, B, 2 * n_h), lambda c: (c, 0, 0)),
            scratch_shapes=[pltpu.VMEM((B, 2 * n_h), jnp.float32)],
        ),
        compiler_params=pltpu.CompilerParams(
            dimension_semantics=("arbitrary",),     # sequential recurrence over chunks
            vmem_limit_bytes=vmem_limit,
        ),
        cost_estimate=cost,
    )(xproj, h0, whrz_blk, whs_blk)


# ---------------------------------------------------------------------------
# Parameter construction (deterministic, mimics nn.Linear default init) + packing
# ---------------------------------------------------------------------------
def _init_linear(key, in_dim, out_dim):
    k = 1.0 / np.sqrt(in_dim)
    kw, kb = jax.random.split(key)
    # stored pre-transposed: (in_dim, out_dim), so math is x @ W + b
    w = jax.random.uniform(kw, (in_dim, out_dim), jnp.float32, -k, k)
    b = jax.random.uniform(kb, (1, out_dim), jnp.float32, -k, k)
    return w, b


def init_mono_gru_params(key, n_input, n_hidden, n_layers):
    params = []
    for i in range(n_layers):
        in_dim = (n_input + n_hidden) if i == 0 else (2 * n_hidden)
        key, k1, k2, k3 = jax.random.split(key, 4)
        ws, bs = _init_linear(k1, in_dim, n_hidden)   # state
        wr, br = _init_linear(k2, in_dim, n_hidden)   # reset
        wz, bz = _init_linear(k3, in_dim, n_hidden)   # update
        params.append(dict(ws=ws, bs=bs, wr=wr, br=br, wz=wz, bz=bz))
    return params


def pack_bigru_params(params_f, params_b, n_input, n_hidden, n_layers):
    """Split each gate weight into x-half / h-half, fuse gates, and build the
    direction-block-diagonal hidden-side weights for the fused kernel."""
    packed = []
    zero = jnp.zeros((n_hidden, n_hidden), jnp.float32)
    for i in range(n_layers):
        n_in = n_input if i == 0 else n_hidden
        pf, pb = params_f[i], params_b[i]

        def xside(p):
            wx = jnp.concatenate([p["wr"][:n_in], p["wz"][:n_in], p["ws"][:n_in]], axis=-1)
            bx = jnp.concatenate([p["br"], p["bz"], p["bs"]], axis=-1).reshape(1, 1, 3 * n_hidden)
            return wx, bx

        wx_f, bx_f = xside(pf)
        wx_b, bx_b = xside(pb)

        # block-diag [reset|update] hidden weights, column order [r_f r_b z_f z_b]
        whrz = jnp.concatenate([
            jnp.concatenate([pf["wr"][n_in:], zero, pf["wz"][n_in:], zero], axis=1),
            jnp.concatenate([zero, pb["wr"][n_in:], zero, pb["wz"][n_in:]], axis=1),
        ], axis=0)                                                      # (2*n_h, 4*n_h)
        # block-diag state hidden weights, column order [s_f s_b]
        whs = jnp.concatenate([
            jnp.concatenate([pf["ws"][n_in:], zero], axis=1),
            jnp.concatenate([zero, pb["ws"][n_in:]], axis=1),
        ], axis=0)                                                      # (2*n_h, 2*n_h)

        packed.append(dict(wx_f=wx_f, bx_f=bx_f, wx_b=wx_b, bx_b=bx_b, whrz=whrz, whs=whs))
    return packed


# ---------------------------------------------------------------------------
# BiGRU forward: glue in plain JAX, fused serial recurrence in Pallas
# ---------------------------------------------------------------------------
@functools.partial(jax.jit, static_argnames=("n_hidden", "n_layers", "mxu_bf16"))
def bigru_forward(packed_params, inps_f, hidd, n_hidden, n_layers, mxu_bf16=False):
    """inps_f: (T, B, n_input); hidd: (2*n_layers, B, n_hidden).

    Returns (out (T,B,2*n_hidden), new_hidd (2*n_layers,B,n_hidden)).
    Note: like the reference module, the backward direction's outputs are NOT
    re-flipped to forward time order before concatenation."""
    x_f = inps_f
    x_b = jnp.flip(inps_f, axis=0)
    T, B, _ = inps_f.shape

    new_h_f, new_h_b = [], []
    for i in range(n_layers):
        p = packed_params[i]
        # Hoisted input projection for all timesteps, per direction (plain XLA).
        xpf = jnp.einsum("tbi,io->tbo", x_f, p["wx_f"],
                         preferred_element_type=jnp.float32) + p["bx_f"]    # (T,B,3*n_h) [r|z|s]
        xpb = jnp.einsum("tbi,io->tbo", x_b, p["wx_b"],
                         preferred_element_type=jnp.float32) + p["bx_b"]
        # Interleave to gate-major / direction-interleaved layout [r_f r_b z_f z_b s_f s_b].
        xproj = jnp.stack([xpf.reshape(T, B, 3, n_hidden),
                           xpb.reshape(T, B, 3, n_hidden)], axis=3).reshape(T, B, 6 * n_hidden)

        h0 = jnp.concatenate([hidd[i], hidd[n_layers + i]], axis=-1)        # (B, 2*n_h)

        whrz, whs = p["whrz"], p["whs"]
        if mxu_bf16:
            # bf16 MXU inputs (f32 accumulation, f32 loop-carried h) for v6e/v7x.
            whrz = whrz.astype(jnp.bfloat16)
            whs = whs.astype(jnp.bfloat16)

        out = _bigru_layer(xproj, h0, whrz, whs)                            # (T, B, 2*n_h)
        x_f = out[..., :n_hidden]
        x_b = out[..., n_hidden:]
        new_h_f.append(x_f[-1])
        new_h_b.append(x_b[-1])

    out_final = jnp.concatenate([x_f, x_b], axis=-1)                        # (T, B, 2*n_hidden)
    new_hidd = jnp.stack(new_h_f + new_h_b, axis=0)                         # (2*n_layers, B, n_hidden)
    return out_final, new_hidd


# ---------------------------------------------------------------------------
# Pure-JAX reference (mirrors the PyTorch loop, concat form) for correctness
# ---------------------------------------------------------------------------
def _ref_mono(params, inps, hidd, n_hidden):
    n_layers = len(params)
    outs = inps
    new_hidds = []
    for i in range(n_layers):
        p = params[i]
        h = hidd[i]
        step_outs = []
        for j in range(outs.shape[0]):
            x = outs[j]
            xh = jnp.concatenate([x, h], axis=-1)
            r = jax.nn.sigmoid(xh @ p["wr"] + p["br"])
            z = jax.nn.sigmoid(xh @ p["wz"] + p["bz"])
            s = jnp.tanh(jnp.concatenate([x, r * h], -1) @ p["ws"] + p["bs"])
            h = z * h + (1.0 - z) * s
            step_outs.append(h)
        outs = jnp.stack(step_outs, 0)
        new_hidds.append(outs[-1])
    return outs, jnp.stack(new_hidds, 0)


def _ref_bigru(params_f, params_b, inps_f, hidd, n_hidden, n_layers):
    inps_b = jnp.flip(inps_f, axis=0)
    out_f, h_f = _ref_mono(params_f, inps_f, hidd[:n_layers], n_hidden)
    out_b, h_b = _ref_mono(params_b, inps_b, hidd[n_layers:], n_hidden)
    return jnp.concatenate([out_f, out_b], -1), jnp.concatenate([h_f, h_b], 0)


# ---------------------------------------------------------------------------
if __name__ == "__main__":
    n_input, n_hidden, n_layers = 8, 32, 2
    T, B = 8, 4

    key = jax.random.PRNGKey(0)
    key, kf, kb, kx = jax.random.split(key, 4)
    params_f = init_mono_gru_params(kf, n_input, n_hidden, n_layers)
    params_b = init_mono_gru_params(kb, n_input, n_hidden, n_layers)
    packed = pack_bigru_params(params_f, params_b, n_input, n_hidden, n_layers)

    inps = jax.random.normal(kx, (T, B, n_input), jnp.float32)
    hidd = jnp.zeros((2 * n_layers, B, n_hidden), jnp.float32)  # BiGRU.init_hidden

    # f32 path (tight correctness check)
    out, new_hidd = bigru_forward(packed, inps, hidd, n_hidden, n_layers, mxu_bf16=False)
    out = jax.block_until_ready(out)
    new_hidd = jax.block_until_ready(new_hidd)
    assert out.shape == (T, B, 2 * n_hidden)
    assert new_hidd.shape == (2 * n_layers, B, n_hidden)

    ref_out, ref_hidd = _ref_bigru(params_f, params_b, inps, hidd, n_hidden, n_layers)
    np.testing.assert_allclose(np.asarray(out), np.asarray(ref_out), atol=1e-5, rtol=1e-5)
    np.testing.assert_allclose(np.asarray(new_hidd), np.asarray(ref_hidd), atol=1e-5, rtol=1e-5)

    # bf16-MXU-input path (v6e/v7x optimization), looser tolerance
    out_bf, hidd_bf = bigru_forward(packed, inps, hidd, n_hidden, n_layers, mxu_bf16=True)
    out_bf = jax.block_until_ready(out_bf)
    hidd_bf = jax.block_until_ready(hidd_bf)
    np.testing.assert_allclose(np.asarray(out_bf), np.asarray(ref_out), atol=5e-2, rtol=5e-2)
    np.testing.assert_allclose(np.asarray(hidd_bf), np.asarray(ref_hidd), atol=5e-2, rtol=5e-2)

    print("KERNEL_OK")
</pallas_src>

<mosaic_0001>
module attributes {stable_mosaic.version = 11 : i64} {
  func.func @_bigru_layer_kernel(%arg0: i32, %arg1: memref<8x4x192xf32, #tpu.memory_space<vmem>>, %arg2: memref<4x64xf32, #tpu.memory_space<vmem>>, %arg3: memref<64x128xf32, #tpu.memory_space<vmem>>, %arg4: memref<64x64xf32, #tpu.memory_space<vmem>>, %arg5: memref<8x4x64xf32, #tpu.memory_space<vmem>>, %arg6: memref<4x64xf32, #tpu.memory_space<vmem>>) attributes {dimension_semantics = [#tpu.dimension_semantics<arbitrary>], iteration_bounds = array<i64: 1>, scalar_prefetch = 0 : i64, scratch_operands = 1 : i64, tpu.core_type = #tpu.core_type<tc>, window_params = [{transform_indices = @transform_0, window_bounds = array<i64: 8, 4, 192>}, {pipeline_mode = #tpu.pipeline_mode<synchronous>, transform_indices = @transform_1, window_bounds = array<i64: 4, 64>}, {pipeline_mode = #tpu.pipeline_mode<synchronous>, transform_indices = @transform_2, window_bounds = array<i64: 64, 128>}, {pipeline_mode = #tpu.pipeline_mode<synchronous>, transform_indices = @transform_3, window_bounds = array<i64: 64, 64>}, {transform_indices = @transform_4, window_bounds = array<i64: 8, 4, 64>}]} {
    %c0_i32 = arith.constant 0 : i32
    %0 = arith.cmpi eq, %arg0, %c0_i32 : i32
    %1 = arith.extui %0 : i1 to i32
    %c0_i32_0 = arith.constant 0 : i32
    %2 = arith.cmpi ne, %1, %c0_i32_0 : i32
    scf.if %2 {
      %c0_72 = arith.constant 0 : index
      %c0_73 = arith.constant 0 : index
      %223 = vector.load %arg2[%c0_72, %c0_73] : memref<4x64xf32, #tpu.memory_space<vmem>>, vector<4x64xf32>
      %c0_74 = arith.constant 0 : index
      %c0_75 = arith.constant 0 : index
      %224 = vector.load %arg6[%c0_74, %c0_75] : memref<4x64xf32, #tpu.memory_space<vmem>>, vector<4x64xf32>
      tpu.vector_store %arg6[%c0_74, %c0_75], %223 {strides = array<i32>} : memref<4x64xf32, #tpu.memory_space<vmem>>, vector<4x64xf32>,
    } else {
    }
    %c0 = arith.constant 0 : index
    %c0_1 = arith.constant 0 : index
    %3 = vector.load %arg3[%c0, %c0_1] : memref<64x128xf32, #tpu.memory_space<vmem>>, vector<64x128xf32>
    %c0_2 = arith.constant 0 : index
    %c0_3 = arith.constant 0 : index
    %4 = vector.load %arg4[%c0_2, %c0_3] : memref<64x64xf32, #tpu.memory_space<vmem>>, vector<64x64xf32>
    %c0_4 = arith.constant 0 : index
    %c0_5 = arith.constant 0 : index
    %5 = vector.load %arg6[%c0_4, %c0_5] : memref<4x64xf32, #tpu.memory_space<vmem>>, vector<4x64xf32>
    %c0_i32_6 = arith.constant 0 : i32
    %6 = arith.index_cast %c0_i32_6 : i32 to index
    %c0_7 = arith.constant 0 : index
    %c0_8 = arith.constant 0 : index
    %7 = vector.load %arg1[%6, %c0_7, %c0_8] : memref<8x4x192xf32, #tpu.memory_space<vmem>>, vector<1x4x192xf32>
    %8 = vector.shape_cast %7 : vector<1x4x192xf32> to vector<4x192xf32>
    %cst = arith.constant dense<0.000000e+00> : vector<4x128xf32>
    %9 = tpu.matmul %5, %3, %cst {dimension_numbers = #tpu.dot_dimension_numbers<[1], [0], [0], [1], [0, 0, 1, 1], [], []>} : vector<4x64xf32>, vector<64x128xf32>, vector<4x128xf32> -> vector<4x128xf32>
    %10 = vector.extract_strided_slice %8 {offsets = [0, 0], sizes = [4, 128], strides = [1, 1]} : vector<4x192xf32> to vector<4x128xf32>
    %11 = arith.addf %10, %9 : vector<4x128xf32>
    %12 = arith.negf %11 : vector<4x128xf32>
    %13 = math.exp %12 : vector<4x128xf32>
    %cst_9 = arith.constant 1.000000e+00 : f32
    %14 = vector.broadcast %cst_9 : f32 to vector<4x128xf32>
    %15 = arith.addf %14, %13 : vector<4x128xf32>
    %16 = arith.divf %14, %15 : vector<4x128xf32>
    %17 = vector.extract_strided_slice %16 {offsets = [0, 0], sizes = [4, 64], strides = [1, 1]} : vector<4x128xf32> to vector<4x64xf32>
    %18 = vector.extract_strided_slice %16 {offsets = [0, 64], sizes = [4, 64], strides = [1, 1]} : vector<4x128xf32> to vector<4x64xf32>
    %19 = arith.mulf %17, %5 : vector<4x64xf32>
    %cst_10 = arith.constant dense<0.000000e+00> : vector<4x64xf32>
    %20 = tpu.matmul %19, %4, %cst_10 {dimension_numbers = #tpu.dot_dimension_numbers<[1], [0], [0], [1], [0, 0, 1, 1], [], []>} : vector<4x64xf32>, vector<64x64xf32>, vector<4x64xf32> -> vector<4x64xf32>
    %21 = vector.extract_strided_slice %8 {offsets = [0, 128], sizes = [4, 64], strides = [1, 1]} : vector<4x192xf32> to vector<4x64xf32>
    %22 = arith.addf %21, %20 : vector<4x64xf32>
    %23 = math.tanh %22 : vector<4x64xf32>
    %24 = arith.mulf %18, %5 : vector<4x64xf32>
    %cst_11 = arith.constant 1.000000e+00 : f32
    %25 = vector.broadcast %cst_11 : f32 to vector<4x64xf32>
    %26 = arith.subf %25, %18 : vector<4x64xf32>
    %27 = arith.mulf %26, %23 : vector<4x64xf32>
    %28 = arith.addf %24, %27 : vector<4x64xf32>
    %29 = arith.index_cast %c0_i32_6 : i32 to index
    %c0_12 = arith.constant 0 : index
    %c0_13 = arith.constant 0 : index
    %30 = vector.load %arg5[%29, %c0_12, %c0_13] : memref<8x4x64xf32, #tpu.memory_space<vmem>>, vector<1x4x64xf32>
    %31 = vector.shape_cast %30 : vector<1x4x64xf32> to vector<4x64xf32>
    %32 = vector.shape_cast %28 : vector<4x64xf32> to vector<1x4x64xf32>
    tpu.vector_store %arg5[%29, %c0_12, %c0_13], %32 {strides = array<i32>} : memref<8x4x64xf32, #tpu.memory_space<vmem>>, vector<1x4x64xf32>,
    %c1_i32 = arith.constant 1 : i32
    %33 = arith.index_cast %c1_i32 : i32 to index
    %c0_14 = arith.constant 0 : index
    %c0_15 = arith.constant 0 : index
    %34 = vector.load %arg1[%33, %c0_14, %c0_15] : memref<8x4x192xf32, #tpu.memory_space<vmem>>, vector<1x4x192xf32>
    %35 = vector.shape_cast %34 : vector<1x4x192xf32> to vector<4x192xf32>
    %cst_16 = arith.constant dense<0.000000e+00> : vector<4x128xf32>
    %36 = tpu.matmul %28, %3, %cst_16 {dimension_numbers = #tpu.dot_dimension_numbers<[1], [0], [0], [1], [0, 0, 1, 1], [], []>} : vector<4x64xf32>, vector<64x128xf32>, vector<4x128xf32> -> vector<4x128xf32>
    %37 = vector.extract_strided_slice %35 {offsets = [0, 0], sizes = [4, 128], strides = [1, 1]} : vector<4x192xf32> to vector<4x128xf32>
    %38 = arith.addf %37, %36 : vector<4x128xf32>
    %39 = arith.negf %38 : vector<4x128xf32>
    %40 = math.exp %39 : vector<4x128xf32>
    %cst_17 = arith.constant 1.000000e+00 : f32
    %41 = vector.broadcast %cst_17 : f32 to vector<4x128xf32>
    %42 = arith.addf %41, %40 : vector<4x128xf32>
    %43 = arith.divf %41, %42 : vector<4x128xf32>
    %44 = vector.extract_strided_slice %43 {offsets = [0, 0], sizes = [4, 64], strides = [1, 1]} : vector<4x128xf32> to vector<4x64xf32>
    %45 = vector.extract_strided_slice %43 {offsets = [0, 64], sizes = [4, 64], strides = [1, 1]} : vector<4x128xf32> to vector<4x64xf32>
    %46 = arith.mulf %44, %28 : vector<4x64xf32>
    %cst_18 = arith.constant dense<0.000000e+00> : vector<4x64xf32>
    %47 = tpu.matmul %46, %4, %cst_18 {dimension_numbers = #tpu.dot_dimension_numbers<[1], [0], [0], [1], [0, 0, 1, 1], [], []>} : vector<4x64xf32>, vector<64x64xf32>, vector<4x64xf32> -> vector<4x64xf32>
    %48 = vector.extract_strided_slice %35 {offsets = [0, 128], sizes = [4, 64], strides = [1, 1]} : vector<4x192xf32> to vector<4x64xf32>
    %49 = arith.addf %48, %47 : vector<4x64xf32>
    %50 = math.tanh %49 : vector<4x64xf32>
    %51 = arith.mulf %45, %28 : vector<4x64xf32>
    %cst_19 = arith.constant 1.000000e+00 : f32
    %52 = vector.broadcast %cst_19 : f32 to vector<4x64xf32>
    %53 = arith.subf %52, %45 : vector<4x64xf32>
    %54 = arith.mulf %53, %50 : vector<4x64xf32>
    %55 = arith.addf %51, %54 : vector<4x64xf32>
    %56 = arith.index_cast %c1_i32 : i32 to index
    %c0_20 = arith.constant 0 : index
    %c0_21 = arith.constant 0 : index
    %57 = vector.load %arg5[%56, %c0_20, %c0_21] : memref<8x4x64xf32, #tpu.memory_space<vmem>>, vector<1x4x64xf32>
    %58 = vector.shape_cast %57 : vector<1x4x64xf32> to vector<4x64xf32>
    %59 = vector.shape_cast %55 : vector<4x64xf32> to vector<1x4x64xf32>
    tpu.vector_store %arg5[%56, %c0_20, %c0_21], %59 {strides = array<i32>} : memref<8x4x64xf32, #tpu.memory_space<vmem>>, vector<1x4x64xf32>,
    %c2_i32 = arith.constant 2 : i32
    %60 = arith.index_cast %c2_i32 : i32 to index
    %c0_22 = arith.constant 0 : index
    %c0_23 = arith.constant 0 : index
    %61 = vector.load %arg1[%60, %c0_22, %c0_23] : memref<8x4x192xf32, #tpu.memory_space<vmem>>, vector<1x4x192xf32>
    %62 = vector.shape_cast %61 : vector<1x4x192xf32> to vector<4x192xf32>
    %cst_24 = arith.constant dense<0.000000e+00> : vector<4x128xf32>
    %63 = tpu.matmul %55, %3, %cst_24 {dimension_numbers = #tpu.dot_dimension_numbers<[1], [0], [0], [1], [0, 0, 1, 1], [], []>} : vector<4x64xf32>, vector<64x128xf32>, vector<4x128xf32> -> vector<4x128xf32>
    %64 = vector.extract_strided_slice %62 {offsets = [0, 0], sizes = [4, 128], strides = [1, 1]} : vector<4x192xf32> to vector<4x128xf32>
    %65 = arith.addf %64, %63 : vector<4x128xf32>
    %66 = arith.negf %65 : vector<4x128xf32>
    %67 = math.exp %66 : vector<4x128xf32>
    %cst_25 = arith.constant 1.000000e+00 : f32
    %68 = vector.broadcast %cst_25 : f32 to vector<4x128xf32>
    %69 = arith.addf %68, %67 : vector<4x128xf32>
    %70 = arith.divf %68, %69 : vector<4x128xf32>
    %71 = vector.extract_strided_slice %70 {offsets = [0, 0], sizes = [4, 64], strides = [1, 1]} : vector<4x128xf32> to vector<4x64xf32>
    %72 = vector.extract_strided_slice %70 {offsets = [0, 64], sizes = [4, 64], strides = [1, 1]} : vector<4x128xf32> to vector<4x64xf32>
    %73 = arith.mulf %71, %55 : vector<4x64xf32>
    %cst_26 = arith.constant dense<0.000000e+00> : vector<4x64xf32>
    %74 = tpu.matmul %73, %4, %cst_26 {dimension_numbers = #tpu.dot_dimension_numbers<[1], [0], [0], [1], [0, 0, 1, 1], [], []>} : vector<4x64xf32>, vector<64x64xf32>, vector<4x64xf32> -> vector<4x64xf32>
    %75 = vector.extract_strided_slice %62 {offsets = [0, 128], sizes = [4, 64], strides = [1, 1]} : vector<4x192xf32> to vector<4x64xf32>
    %76 = arith.addf %75, %74 : vector<4x64xf32>
    %77 = math.tanh %76 : vector<4x64xf32>
    %78 = arith.mulf %72, %55 : vector<4x64xf32>
    %cst_27 = arith.constant 1.000000e+00 : f32
    %79 = vector.broadcast %cst_27 : f32 to vector<4x64xf32>
    %80 = arith.subf %79, %72 : vector<4x64xf32>
    %81 = arith.mulf %80, %77 : vector<4x64xf32>
    %82 = arith.addf %78, %81 : vector<4x64xf32>
    %83 = arith.index_cast %c2_i32 : i32 to index
    %c0_28 = arith.constant 0 : index
    %c0_29 = arith.constant 0 : index
    %84 = vector.load %arg5[%83, %c0_28, %c0_29] : memref<8x4x64xf32, #tpu.memory_space<vmem>>, vector<1x4x64xf32>
    %85 = vector.shape_cast %84 : vector<1x4x64xf32> to vector<4x64xf32>
    %86 = vector.shape_cast %82 : vector<4x64xf32> to vector<1x4x64xf32>
    tpu.vector_store %arg5[%83, %c0_28, %c0_29], %86 {strides = array<i32>} : memref<8x4x64xf32, #tpu.memory_space<vmem>>, vector<1x4x64xf32>,
    %c3_i32 = arith.constant 3 : i32
    %87 = arith.index_cast %c3_i32 : i32 to index
    %c0_30 = arith.constant 0 : index
    %c0_31 = arith.constant 0 : index
    %88 = vector.load %arg1[%87, %c0_30, %c0_31] : memref<8x4x192xf32, #tpu.memory_space<vmem>>, vector<1x4x192xf32>
    %89 = vector.shape_cast %88 : vector<1x4x192xf32> to vector<4x192xf32>
    %cst_32 = arith.constant dense<0.000000e+00> : vector<4x128xf32>
    %90 = tpu.matmul %82, %3, %cst_32 {dimension_numbers = #tpu.dot_dimension_numbers<[1], [0], [0], [1], [0, 0, 1, 1], [], []>} : vector<4x64xf32>, vector<64x128xf32>, vector<4x128xf32> -> vector<4x128xf32>
    %91 = vector.extract_strided_slice %89 {offsets = [0, 0], sizes = [4, 128], strides = [1, 1]} : vector<4x192xf32> to vector<4x128xf32>
    %92 = arith.addf %91, %90 : vector<4x128xf32>
    %93 = arith.negf %92 : vector<4x128xf32>
    %94 = math.exp %93 : vector<4x128xf32>
    %cst_33 = arith.constant 1.000000e+00 : f32
    %95 = vector.broadcast %cst_33 : f32 to vector<4x128xf32>
    %96 = arith.addf %95, %94 : vector<4x128xf32>
    %97 = arith.divf %95, %96 : vector<4x128xf32>
    %98 = vector.extract_strided_slice %97 {offsets = [0, 0], sizes = [4, 64], strides = [1, 1]} : vector<4x128xf32> to vector<4x64xf32>
    %99 = vector.extract_strided_slice %97 {offsets = [0, 64], sizes = [4, 64], strides = [1, 1]} : vector<4x128xf32> to vector<4x64xf32>
    %100 = arith.mulf %98, %82 : vector<4x64xf32>
    %cst_34 = arith.constant dense<0.000000e+00> : vector<4x64xf32>
    %101 = tpu.matmul %100, %4, %cst_34 {dimension_numbers = #tpu.dot_dimension_numbers<[1], [0], [0], [1], [0, 0, 1, 1], [], []>} : vector<4x64xf32>, vector<64x64xf32>, vector<4x64xf32> -> vector<4x64xf32>
    %102 = vector.extract_strided_slice %89 {offsets = [0, 128], sizes = [4, 64], strides = [1, 1]} : vector<4x192xf32> to vector<4x64xf32>
    %103 = arith.addf %102, %101 : vector<4x64xf32>
    %104 = math.tanh %103 : vector<4x64xf32>
    %105 = arith.mulf %99, %82 : vector<4x64xf32>
    %cst_35 = arith.constant 1.000000e+00 : f32
    %106 = vector.broadcast %cst_35 : f32 to vector<4x64xf32>
    %107 = arith.subf %106, %99 : vector<4x64xf32>
    %108 = arith.mulf %107, %104 : vector<4x64xf32>
    %109 = arith.addf %105, %108 : vector<4x64xf32>
    %110 = arith.index_cast %c3_i32 : i32 to index
    %c0_36 = arith.constant 0 : index
    %c0_37 = arith.constant 0 : index
    %111 = vector.load %arg5[%110, %c0_36, %c0_37] : memref<8x4x64xf32, #tpu.memory_space<vmem>>, vector<1x4x64xf32>
    %112 = vector.shape_cast %111 : vector<1x4x64xf32> to vector<4x64xf32>
    %113 = vector.shape_cast %109 : vector<4x64xf32> to vector<1x4x64xf32>
    tpu.vector_store %arg5[%110, %c0_36, %c0_37], %113 {strides = array<i32>} : memref<8x4x64xf32, #tpu.memory_space<vmem>>, vector<1x4x64xf32>,
    %c4_i32 = arith.constant 4 : i32
    %114 = arith.index_cast %c4_i32 : i32 to index
    %c0_38 = arith.constant 0 : index
    %c0_39 = arith.constant 0 : index
    %115 = vector.load %arg1[%114, %c0_38, %c0_39] : memref<8x4x192xf32, #tpu.memory_space<vmem>>, vector<1x4x192xf32>
    %116 = vector.shape_cast %115 : vector<1x4x192xf32> to vector<4x192xf32>
    %cst_40 = arith.constant dense<0.000000e+00> : vector<4x128xf32>
    %117 = tpu.matmul %109, %3, %cst_40 {dimension_numbers = #tpu.dot_dimension_numbers<[1], [0], [0], [1], [0, 0, 1, 1], [], []>} : vector<4x64xf32>, vector<64x128xf32>, vector<4x128xf32> -> vector<4x128xf32>
    %118 = vector.extract_strided_slice %116 {offsets = [0, 0], sizes = [4, 128], strides = [1, 1]} : vector<4x192xf32> to vector<4x128xf32>
    %119 = arith.addf %118, %117 : vector<4x128xf32>
    %120 = arith.negf %119 : vector<4x128xf32>
    %121 = math.exp %120 : vector<4x128xf32>
    %cst_41 = arith.constant 1.000000e+00 : f32
    %122 = vector.broadcast %cst_41 : f32 to vector<4x128xf32>
    %123 = arith.addf %122, %121 : vector<4x128xf32>
    %124 = arith.divf %122, %123 : vector<4x128xf32>
    %125 = vector.extract_strided_slice %124 {offsets = [0, 0], sizes = [4, 64], strides = [1, 1]} : vector<4x128xf32> to vector<4x64xf32>
    %126 = vector.extract_strided_slice %124 {offsets = [0, 64], sizes = [4, 64], strides = [1, 1]} : vector<4x128xf32> to vector<4x64xf32>
    %127 = arith.mulf %125, %109 : vector<4x64xf32>
    %cst_42 = arith.constant dense<0.000000e+00> : vector<4x64xf32>
    %128 = tpu.matmul %127, %4, %cst_42 {dimension_numbers = #tpu.dot_dimension_numbers<[1], [0], [0], [1], [0, 0, 1, 1], [], []>} : vector<4x64xf32>, vector<64x64xf32>, vector<4x64xf32> -> vector<4x64xf32>
    %129 = vector.extract_strided_slice %116 {offsets = [0, 128], sizes = [4, 64], strides = [1, 1]} : vector<4x192xf32> to vector<4x64xf32>
    %130 = arith.addf %129, %128 : vector<4x64xf32>
    %131 = math.tanh %130 : vector<4x64xf32>
    %132 = arith.mulf %126, %109 : vector<4x64xf32>
    %cst_43 = arith.constant 1.000000e+00 : f32
    %133 = vector.broadcast %cst_43 : f32 to vector<4x64xf32>
    %134 = arith.subf %133, %126 : vector<4x64xf32>
    %135 = arith.mulf %134, %131 : vector<4x64xf32>
    %136 = arith.addf %132, %135 : vector<4x64xf32>
    %137 = arith.index_cast %c4_i32 : i32 to index
    %c0_44 = arith.constant 0 : index
    %c0_45 = arith.constant 0 : index
    %138 = vector.load %arg5[%137, %c0_44, %c0_45] : memref<8x4x64xf32, #tpu.memory_space<vmem>>, vector<1x4x64xf32>
    %139 = vector.shape_cast %138 : vector<1x4x64xf32> to vector<4x64xf32>
    %140 = vector.shape_cast %136 : vector<4x64xf32> to vector<1x4x64xf32>
    tpu.vector_store %arg5[%137, %c0_44, %c0_45], %140 {strides = array<i32>} : memref<8x4x64xf32, #tpu.memory_space<vmem>>, vector<1x4x64xf32>,
    %c5_i32 = arith.constant 5 : i32
    %141 = arith.index_cast %c5_i32 : i32 to index
    %c0_46 = arith.constant 0 : index
    %c0_47 = arith.constant 0 : index
    %142 = vector.load %arg1[%141, %c0_46, %c0_47] : memref<8x4x192xf32, #tpu.memory_space<vmem>>, vector<1x4x192xf32>
    %143 = vector.shape_cast %142 : vector<1x4x192xf32> to vector<4x192xf32>
    %cst_48 = arith.constant dense<0.000000e+00> : vector<4x128xf32>
    %144 = tpu.matmul %136, %3, %cst_48 {dimension_numbers = #tpu.dot_dimension_numbers<[1], [0], [0], [1], [0, 0, 1, 1], [], []>} : vector<4x64xf32>, vector<64x128xf32>, vector<4x128xf32> -> vector<4x128xf32>
    %145 = vector.extract_strided_slice %143 {offsets = [0, 0], sizes = [4, 128], strides = [1, 1]} : vector<4x192xf32> to vector<4x128xf32>
    %146 = arith.addf %145, %144 : vector<4x128xf32>
    %147 = arith.negf %146 : vector<4x128xf32>
    %148 = math.exp %147 : vector<4x128xf32>
    %cst_49 = arith.constant 1.000000e+00 : f32
    %149 = vector.broadcast %cst_49 : f32 to vector<4x128xf32>
    %150 = arith.addf %149, %148 : vector<4x128xf32>
    %151 = arith.divf %149, %150 : vector<4x128xf32>
    %152 = vector.extract_strided_slice %151 {offsets = [0, 0], sizes = [4, 64], strides = [1, 1]} : vector<4x128xf32> to vector<4x64xf32>
    %153 = vector.extract_strided_slice %151 {offsets = [0, 64], sizes = [4, 64], strides = [1, 1]} : vector<4x128xf32> to vector<4x64xf32>
    %154 = arith.mulf %152, %136 : vector<4x64xf32>
    %cst_50 = arith.constant dense<0.000000e+00> : vector<4x64xf32>
    %155 = tpu.matmul %154, %4, %cst_50 {dimension_numbers = #tpu.dot_dimension_numbers<[1], [0], [0], [1], [0, 0, 1, 1], [], []>} : vector<4x64xf32>, vector<64x64xf32>, vector<4x64xf32> -> vector<4x64xf32>
    %156 = vector.extract_strided_slice %143 {offsets = [0, 128], sizes = [4, 64], strides = [1, 1]} : vector<4x192xf32> to vector<4x64xf32>
    %157 = arith.addf %156, %155 : vector<4x64xf32>
    %158 = math.tanh %157 : vector<4x64xf32>
    %159 = arith.mulf %153, %136 : vector<4x64xf32>
    %cst_51 = arith.constant 1.000000e+00 : f32
    %160 = vector.broadcast %cst_51 : f32 to vector<4x64xf32>
    %161 = arith.subf %160, %153 : vector<4x64xf32>
    %162 = arith.mulf %161, %158 : vector<4x64xf32>
    %163 = arith.addf %159, %162 : vector<4x64xf32>
    %164 = arith.index_cast %c5_i32 : i32 to index
    %c0_52 = arith.constant 0 : index
    %c0_53 = arith.constant 0 : index
    %165 = vector.load %arg5[%164, %c0_52, %c0_53] : memref<8x4x64xf32, #tpu.memory_space<vmem>>, vector<1x4x64xf32>
    %166 = vector.shape_cast %165 : vector<1x4x64xf32> to vector<4x64xf32>
    %167 = vector.shape_cast %163 : vector<4x64xf32> to vector<1x4x64xf32>
    tpu.vector_store %arg5[%164, %c0_52, %c0_53], %167 {strides = array<i32>} : memref<8x4x64xf32, #tpu.memory_space<vmem>>, vector<1x4x64xf32>,
    %c6_i32 = arith.constant 6 : i32
    %168 = arith.index_cast %c6_i32 : i32 to index
    %c0_54 = arith.constant 0 : index
    %c0_55 = arith.constant 0 : index
    %169 = vector.load %arg1[%168, %c0_54, %c0_55] : memref<8x4x192xf32, #tpu.memory_space<vmem>>, vector<1x4x192xf32>
    %170 = vector.shape_cast %169 : vector<1x4x192xf32> to vector<4x192xf32>
    %cst_56 = arith.constant dense<0.000000e+00> : vector<4x128xf32>
    %171 = tpu.matmul %163, %3, %cst_56 {dimension_numbers = #tpu.dot_dimension_numbers<[1], [0], [0], [1], [0, 0, 1, 1], [], []>} : vector<4x64xf32>, vector<64x128xf32>, vector<4x128xf32> -> vector<4x128xf32>
    %172 = vector.extract_strided_slice %170 {offsets = [0, 0], sizes = [4, 128], strides = [1, 1]} : vector<4x192xf32> to vector<4x128xf32>
    %173 = arith.addf %172, %171 : vector<4x128xf32>
    %174 = arith.negf %173 : vector<4x128xf32>
    %175 = math.exp %174 : vector<4x128xf32>
    %cst_57 = arith.constant 1.000000e+00 : f32
    %176 = vector.broadcast %cst_57 : f32 to vector<4x128xf32>
    %177 = arith.addf %176, %175 : vector<4x128xf32>
    %178 = arith.divf %176, %177 : vector<4x128xf32>
    %179 = vector.extract_strided_slice %178 {offsets = [0, 0], sizes = [4, 64], strides = [1, 1]} : vector<4x128xf32> to vector<4x64xf32>
    %180 = vector.extract_strided_slice %178 {offsets = [0, 64], sizes = [4, 64], strides = [1, 1]} : vector<4x128xf32> to vector<4x64xf32>
    %181 = arith.mulf %179, %163 : vector<4x64xf32>
    %cst_58 = arith.constant dense<0.000000e+00> : vector<4x64xf32>
    %182 = tpu.matmul %181, %4, %cst_58 {dimension_numbers = #tpu.dot_dimension_numbers<[1], [0], [0], [1], [0, 0, 1, 1], [], []>} : vector<4x64xf32>, vector<64x64xf32>, vector<4x64xf32> -> vector<4x64xf32>
    %183 = vector.extract_strided_slice %170 {offsets = [0, 128], sizes = [4, 64], strides = [1, 1]} : vector<4x192xf32> to vector<4x64xf32>
    %184 = arith.addf %183, %182 : vector<4x64xf32>
    %185 = math.tanh %184 : vector<4x64xf32>
    %186 = arith.mulf %180, %163 : vector<4x64xf32>
    %cst_59 = arith.constant 1.000000e+00 : f32
    %187 = vector.broadcast %cst_59 : f32 to vector<4x64xf32>
    %188 = arith.subf %187, %180 : vector<4x64xf32>
    %189 = arith.mulf %188, %185 : vector<4x64xf32>
    %190 = arith.addf %186, %189 : vector<4x64xf32>
    %191 = arith.index_cast %c6_i32 : i32 to index
    %c0_60 = arith.constant 0 : index
    %c0_61 = arith.constant 0 : index
    %192 = vector.load %arg5[%191, %c0_60, %c0_61] : memref<8x4x64xf32, #tpu.memory_space<vmem>>, vector<1x4x64xf32>
    %193 = vector.shape_cast %192 : vector<1x4x64xf32> to vector<4x64xf32>
    %194 = vector.shape_cast %190 : vector<4x64xf32> to vector<1x4x64xf32>
    tpu.vector_store %arg5[%191, %c0_60, %c0_61], %194 {strides = array<i32>} : memref<8x4x64xf32, #tpu.memory_space<vmem>>, vector<1x4x64xf32>,
    %c7_i32 = arith.constant 7 : i32
    %195 = arith.index_cast %c7_i32 : i32 to index
    %c0_62 = arith.constant 0 : index
    %c0_63 = arith.constant 0 : index
    %196 = vector.load %arg1[%195, %c0_62, %c0_63] : memref<8x4x192xf32, #tpu.memory_space<vmem>>, vector<1x4x192xf32>
    %197 = vector.shape_cast %196 : vector<1x4x192xf32> to vector<4x192xf32>
    %cst_64 = arith.constant dense<0.000000e+00> : vector<4x128xf32>
    %198 = tpu.matmul %190, %3, %cst_64 {dimension_numbers = #tpu.dot_dimension_numbers<[1], [0], [0], [1], [0, 0, 1, 1], [], []>} : vector<4x64xf32>, vector<64x128xf32>, vector<4x128xf32> -> vector<4x128xf32>
    %199 = vector.extract_strided_slice %197 {offsets = [0, 0], sizes = [4, 128], strides = [1, 1]} : vector<4x192xf32> to vector<4x128xf32>
    %200 = arith.addf %199, %198 : vector<4x128xf32>
    %201 = arith.negf %200 : vector<4x128xf32>
    %202 = math.exp %201 : vector<4x128xf32>
    %cst_65 = arith.constant 1.000000e+00 : f32
    %203 = vector.broadcast %cst_65 : f32 to vector<4x128xf32>
    %204 = arith.addf %203, %202 : vector<4x128xf32>
    %205 = arith.divf %203, %204 : vector<4x128xf32>
    %206 = vector.extract_strided_slice %205 {offsets = [0, 0], sizes = [4, 64], strides = [1, 1]} : vector<4x128xf32> to vector<4x64xf32>
    %207 = vector.extract_strided_slice %205 {offsets = [0, 64], sizes = [4, 64], strides = [1, 1]} : vector<4x128xf32> to vector<4x64xf32>
    %208 = arith.mulf %206, %190 : vector<4x64xf32>
    %cst_66 = arith.constant dense<0.000000e+00> : vector<4x64xf32>
    %209 = tpu.matmul %208, %4, %cst_66 {dimension_numbers = #tpu.dot_dimension_numbers<[1], [0], [0], [1], [0, 0, 1, 1], [], []>} : vector<4x64xf32>, vector<64x64xf32>, vector<4x64xf32> -> vector<4x64xf32>
    %210 = vector.extract_strided_slice %197 {offsets = [0, 128], sizes = [4, 64], strides = [1, 1]} : vector<4x192xf32> to vector<4x64xf32>
    %211 = arith.addf %210, %209 : vector<4x64xf32>
    %212 = math.tanh %211 : vector<4x64xf32>
    %213 = arith.mulf %207, %190 : vector<4x64xf32>
    %cst_67 = arith.constant 1.000000e+00 : f32
    %214 = vector.broadcast %cst_67 : f32 to vector<4x64xf32>
    %215 = arith.subf %214, %207 : vector<4x64xf32>
    %216 = arith.mulf %215, %212 : vector<4x64xf32>
    %217 = arith.addf %213, %216 : vector<4x64xf32>
    %218 = arith.index_cast %c7_i32 : i32 to index
    %c0_68 = arith.constant 0 : index
    %c0_69 = arith.constant 0 : index
    %219 = vector.load %arg5[%218, %c0_68, %c0_69] : memref<8x4x64xf32, #tpu.memory_space<vmem>>, vector<1x4x64xf32>
    %220 = vector.shape_cast %219 : vector<1x4x64xf32> to vector<4x64xf32>
    %221 = vector.shape_cast %217 : vector<4x64xf32> to vector<1x4x64xf32>
    tpu.vector_store %arg5[%218, %c0_68, %c0_69], %221 {strides = array<i32>} : memref<8x4x64xf32, #tpu.memory_space<vmem>>, vector<1x4x64xf32>,
    %c8_i32 = arith.constant 8 : i32
    %c0_70 = arith.constant 0 : index
    %c0_71 = arith.constant 0 : index
    %222 = vector.load %arg6[%c0_70, %c0_71] : memref<4x64xf32, #tpu.memory_space<vmem>>, vector<4x64xf32>
    tpu.vector_store %arg6[%c0_70, %c0_71], %217 {strides = array<i32>} : memref<4x64xf32, #tpu.memory_space<vmem>>, vector<4x64xf32>,
    return
  }
  func.func @transform_0(%arg0: i32) -> (i32, i32, i32) {
    %c0_i32 = arith.constant 0 : i32
    %c0_i32_0 = arith.constant 0 : i32
    %c0_i32_1 = arith.constant 0 : i32
    return %arg0, %c0_i32, %c0_i32_0 : i32, i32, i32
  }
  func.func @transform_1(%arg0: i32) -> (i32, i32) {
    %c0_i32 = arith.constant 0 : i32
    %c0_i32_0 = arith.constant 0 : i32
    %c0_i32_1 = arith.constant 0 : i32
    return %c0_i32, %c0_i32_0 : i32, i32
  }
  func.func @transform_2(%arg0: i32) -> (i32, i32) {
    %c0_i32 = arith.constant 0 : i32
    %c0_i32_0 = arith.constant 0 : i32
    %c0_i32_1 = arith.constant 0 : i32
    return %c0_i32, %c0_i32_0 : i32, i32
  }
  func.func @transform_3(%arg0: i32) -> (i32, i32) {
    %c0_i32 = arith.constant 0 : i32
    %c0_i32_0 = arith.constant 0 : i32
    %c0_i32_1 = arith.constant 0 : i32
    return %c0_i32, %c0_i32_0 : i32, i32
  }
  func.func @transform_4(%arg0: i32) -> (i32, i32, i32) {
    %c0_i32 = arith.constant 0 : i32
    %c0_i32_0 = arith.constant 0 : i32
    %c0_i32_1 = arith.constant 0 : i32
    return %arg0, %c0_i32, %c0_i32_0 : i32, i32, i32
  }
}

</mosaic_0001>

<bundles_post_ra>
// kernel: bigru_forward.2
= control target key start
LH: loop header
LB: loop body
LE: loop exit
PB: predicated region body
PF: predicated region fallthrough
CT: control target
= control target key end

     0   :  { %vm22_vm0 = vcmask 519168   ;;  %s903_s30 = smov 64   ;;  %vm42_vm1 = vcmask 523264   ;;  %s1269_s2 = inlined_call_operand.vmem [shape: f32[64,128], index: 2, kind: input, shape index: {}]   ;;  %s1270_s1 = inlined_call_operand.vmem [shape: f32[4,64], index: 1, kind: input, shape index: {}]   ;;  %s1271_s3 = inlined_call_operand.vmem [shape: f32[64,64], index: 3, kind: input, shape index: {}]   ;;  %s1272_s0 = inlined_call_operand.vmem [shape: f32[8,4,192], index: 0, kind: input, shape index: {}]   ;;  %s1273_s4 = inlined_call_operand.vmem [shape: f32[8,4,64], index: 4, kind: output, shape index: {}]  }
   0x1   :  { %v932_v0 = vld [vmem:[%s1269_s2 + $0x38] sm:$0xff]  ;;  %v937_v1 = vld [vmem:[%s1269_s2 + $0x30] sm:$0xff]  ;;  %v944_v2 = vld [vmem:[%s1269_s2 + $0x28] sm:$0xff] }
   0x2   :  { %54 = vmatpush.msra.mxu0 %v932_v0  ;;  %150 = vmatpush.msra.mxu2 %v932_v0  ;;  %v21_v3 = vld [vmem:[%s1270_s1] sm:$0xf]  ;;  %v962_v5 = vld [vmem:[%s1269_s2 + $0x18] sm:$0xff]  ;;  %v969_v6 = vld [vmem:[%s1269_s2 + $0x10] sm:$0xff] }
   0x3   :  { %23 = vst.msk [vmem:[#allocation2] sm:$0xf] %vm22_vm0, %v21_v3  ;;  %v955_v4 = vld [vmem:[%s1269_s2 + $0x20] sm:$0xff]  ;;  %v976_v7 = vld [vmem:[%s1269_s2 + $0x8] sm:$0xff]  ;;  %v1022_v10 = vld [vmem:[%s1271_s3 + $0x38] sm:$0xff] }
   0x4   :  { %55 = vmatpush.msra.mxu0 %v937_v1  ;;  %151 = vmatpush.msra.mxu2 %v937_v1  ;;  %v986_v9 = vld [vmem:[%s1269_s2] sm:$0xff]  ;;  %v1027_v11 = vld [vmem:[%s1271_s3 + $0x30] sm:$0xff]  ;;  %v1034_v12 = vld [vmem:[%s1271_s3 + $0x28] sm:$0xff] }
   0x5   :  { %98 = vmatpush.msra.mxu1 %v1022_v10  ;;  %197 = vmatpush.msra.mxu3 %v1022_v10  ;;  %v1041_v13 = vld [vmem:[%s1271_s3 + $0x20] sm:$0xff]  ;;  %v1048_v14 = vld [vmem:[%s1271_s3 + $0x18] sm:$0xff]  ;;  %v1055_v15 = vld [vmem:[%s1271_s3 + $0x10] sm:$0xff] }
   0x6   :  { %56 = vmatpush.msra.mxu0 %v944_v2  ;;  %152 = vmatpush.msra.mxu2 %v944_v2  ;;  %v1062_v16 = vld [vmem:[%s1271_s3 + $0x8] sm:$0xff]  ;;  %v41_v17 = vld [vmem:[%s1272_s0] sm:$0xff] }
   0x7   :  { %99 = vmatpush.msra.mxu1 %v1027_v11  ;;  %198 = vmatpush.msra.mxu3 %v1027_v11  ;;  %v1074_v18 = vld [vmem:[%s1271_s3] sm:$0xff]  ;;  %v111_v35 = vrot.slane %v41_v17, 4  ;;  %v819_v48 = vld [vmem:[%s1272_s0 + $0x8] sm:$0xff] }
   0x8   :  { %57 = vmatpush.msra.mxu0 %v955_v4  ;;  %153 = vmatpush.msra.mxu2 %v955_v4 }
   0x9   :  { %100 = vmatpush.msra.mxu1 %v1034_v12  ;;  %199 = vmatpush.msra.mxu3 %v1034_v12 }
   0xa   :  { %58 = vmatpush.msra.mxu0 %v962_v5  ;;  %154 = vmatpush.msra.mxu2 %v962_v5  ;;  %v978_v8 = vld [vmem:[#allocation2] sm:$0xf] }
   0xb   :  { %115 = vrot.lane.b32.xlu0 %v978_v8, %s903_s30  ;;  %101 = vmatpush.msra.mxu1 %v1041_v13 }
   0xc   :  { %59 = vmatpush.msra.mxu0 %v969_v6  ;;  %155 = vmatpush.msra.mxu2 %v969_v6 }
   0xd   :  { %200 = vmatpush.msra.mxu3 %v1041_v13  ;;  %102 = vmatpush.msra.mxu1 %v1048_v14 }
   0xe   :  { %60 = vmatpush.msra.mxu0 %v976_v7  ;;  %156 = vmatpush.msra.mxu2 %v976_v7 }
   0xf   :  { %201 = vmatpush.msra.mxu3 %v1048_v14  ;;  %103 = vmatpush.msra.mxu1 %v1055_v15 }
  0x10   :  { %61 = vmatpush.msra.mxu0 %v986_v9  ;;  %157 = vmatpush.msra.mxu2 %v986_v9 }
  0x11   :  { %816 = vmatmul.msk.f32.vlgmr.msra.gmra.mxu0 %vm42_vm1, %v978_v8  ;;  %202 = vmatpush.msra.mxu3 %v1055_v15 }
  0x12   :  { %246 = vmatpush.msrb.mxu0 %v932_v0  ;;  %342 = vmatpush.msrb.mxu2 %v932_v0 }
  0x13   :  { %104 = vmatpush.msra.mxu1 %v1062_v16  ;;  %203 = vmatpush.msra.mxu3 %v1062_v16 }
  0x14   :  { %247 = vmatpush.msrb.mxu0 %v937_v1  ;;  %343 = vmatpush.msrb.mxu2 %v937_v1 }
  0x15   :  { %105 = vmatpush.msra.mxu1 %v1074_v18  ;;  %204 = vmatpush.msra.mxu3 %v1074_v18 }
  0x16   :  { %248 = vmatpush.msrb.mxu0 %v944_v2  ;;  %344 = vmatpush.msrb.mxu2 %v944_v2 }
  0x17   :  { %293 = vmatpush.msrb.mxu1 %v1022_v10  ;;  %389 = vmatpush.msrb.mxu3 %v1022_v10 }
  0x18   :  { %249 = vmatpush.msrb.mxu0 %v955_v4  ;;  %345 = vmatpush.msrb.mxu2 %v955_v4 }
  0x19   :  { %294 = vmatpush.msrb.mxu1 %v1027_v11  ;;  %390 = vmatpush.msrb.mxu3 %v1027_v11 }
  0x1a   :  { %250 = vmatpush.msrb.mxu0 %v962_v5  ;;  %346 = vmatpush.msrb.mxu2 %v962_v5 }
  0x1b   :  { %295 = vmatpush.msrb.mxu1 %v1034_v12  ;;  %391 = vmatpush.msrb.mxu3 %v1034_v12 }
  0x1c   :  { %251 = vmatpush.msrb.mxu0 %v969_v6  ;;  %347 = vmatpush.msrb.mxu2 %v969_v6 }
  0x1d   :  { %296 = vmatpush.msrb.mxu1 %v1041_v13  ;;  %392 = vmatpush.msrb.mxu3 %v1041_v13 }
  0x1e   :  { %252 = vmatpush.msrb.mxu0 %v976_v7  ;;  %348 = vmatpush.msrb.mxu2 %v976_v7 }
  0x1f   :  { %297 = vmatpush.msrb.mxu1 %v1048_v14  ;;  %393 = vmatpush.msrb.mxu3 %v1048_v14 }
  0x20   :  { %253 = vmatpush.msrb.mxu0 %v986_v9  ;;  %349 = vmatpush.msrb.mxu2 %v986_v9 }
  0x21   :  { %298 = vmatpush.msrb.mxu1 %v1055_v15  ;;  %394 = vmatpush.msrb.mxu3 %v1055_v15 }
  0x22   :  { %438 = vmatpush.msra.mxu0 %v932_v0 }
  0x23   :  { %299 = vmatpush.msrb.mxu1 %v1062_v16  ;;  %395 = vmatpush.msrb.mxu3 %v1062_v16 }
  0x24   :  { %439 = vmatpush.msra.mxu0 %v937_v1 }
  0x25   :  { %300 = vmatpush.msrb.mxu1 %v1074_v18  ;;  %396 = vmatpush.msrb.mxu3 %v1074_v18 }
  0x26   :  { %440 = vmatpush.msra.mxu0 %v944_v2 }
  0x28   :  { %441 = vmatpush.msra.mxu0 %v955_v4 }
  0x2a   :  { %442 = vmatpush.msra.mxu0 %v962_v5 }
  0x2c   :  { %443 = vmatpush.msra.mxu0 %v969_v6 }
  0x2e   :  { %444 = vmatpush.msra.mxu0 %v976_v7 }
  0x30   :  { %445 = vmatpush.msra.mxu0 %v986_v9 }
  0x7d   :  { %v116_v39 = vpop.permute.xlu0 %115 }
  0x8e   :  { %v63_v19 = vpop.f32.mrf.mxu0 }
  0x8f   :  { %v66_v20 = vadd.f32 %v63_v19, %v41_v17  ;;  %v210_v17 = vrot.slane %v819_v48, 4 }
  0x91   :  { %v817_v21 = vmul.f32 -1.442695, %v66_v20 }
  0x93   :  { %855 = vpow2.f32 %v817_v21 }
  0x99   :  { %v856_v22 = vpop.eup %855 }
  0x9a   :  { %v70_v23 = vadd.f32 1.0, %v856_v22 }
  0x9c   :  { %857 = vrcp.f32 %v70_v23  ;;  %v82_v27 = vand.u32 2147483648, %v70_v23  ;;  %v80_v29 = vand.u32 2147483647, %v70_v23  ;;  %vm76_vm3 = vweird.f32 %v70_v23 }
  0x9e   :  { %v83_v31 = vor.u32 1.1754944e-38, %v82_v27  ;;  %vm81_vm5 = vcmp.eq.f32.partialorder %v80_v29, 8.507059e+37 }
  0xa2   :  { %v858_v24 = vpop.eup %857 }
  0xa3   :  { %v72_v25 = vmul.f32 %v858_v24, %v70_v23  ;;  %vm77_vm2 = vweird.f32 %v858_v24 }
  0xa4   :  { %vm78_vm4 = vmor %vm76_vm3, %vm77_vm2 }
  0xa5   :  { %v73_v26 = vsub.f32 1.0, %v72_v25 }
  0xa7   :  { %v74_v28 = vmul.f32 %v858_v24, %v73_v26 }
  0xa9   :  { %v75_v30 = vadd.f32 %v858_v24, %v74_v28 }
  0xab   :  { %v79_v32 = vsel %vm78_vm4, %v858_v24, %v75_v30  ;;  %v824_v30 = vld [vmem:[%s1272_s0 + $0x10] sm:$0xff] }
  0xac   :  { %v84_v33 = vsel %vm81_vm5, %v83_v31, %v79_v32 }
  0xad   :  { %v86_v34 = vmul.f32 %v84_v33, %v978_v8  ;;  %v119_v40 = vsub.f32 1.0, %v84_v33  ;;  %v118_v42 = vmul.f32 %v116_v39, %v84_v33 }
  0xaf   :  { %818 = vmatmul.msk.f32.vlgmr.msra.gmra.mxu1 %vm42_vm1, %v86_v34 }
  0xb0   :  { %485 = vmatpush.msra.mxu1 %v1022_v10 }
  0xb2   :  { %486 = vmatpush.msra.mxu1 %v1027_v11 }
  0xb4   :  { %487 = vmatpush.msra.mxu1 %v1034_v12 }
  0xb6   :  { %488 = vmatpush.msra.mxu1 %v1041_v13 }
  0xb8   :  { %489 = vmatpush.msra.mxu1 %v1048_v14 }
  0xba   :  { %490 = vmatpush.msra.mxu1 %v1055_v15 }
  0xbc   :  { %491 = vmatpush.msra.mxu1 %v1062_v16 }
  0xbe   :  { %492 = vmatpush.msra.mxu1 %v1074_v18 }
 0x12c   :  { %v107_v36 = vpop.f32.mrf.mxu1 }
 0x12d   :  { %v113_v37 = vadd.f32 %v111_v35, %v107_v36 }
 0x12f   :  { %859 = vtanh.f32 %v113_v37 }
 0x135   :  { %v860_v38 = vpop.eup %859 }
 0x136   :  { %121 = vrot.lane.b32.xlu0 %v860_v38, %s903_s30 }
 0x1a8   :  { %v122_v41 = vpop.permute.xlu0 %121 }
 0x1a9   :  { %v124_v43 = vmul.f32 %v122_v41, %v119_v40 }
 0x1ab   :  { %v125_v44 = vadd.f32 %v124_v43, %v118_v42 }
 0x1ad   :  { %127 = vst [vmem:[#allocation1] ss:$2 sm:$0xff] %v125_v44 }
 0x1b4   :  { %v1105_v45 = vld.sshfl [vmem:[#allocation1] sm:$0xff pattern:$0x75316420] }
 0x1b5   :  { %136 = vst [vmem:[#allocation1] ss:$2 sm:$0xff] %v125_v44 }
 0x1bc   :  { %v137_v46 = vld.sshfl [vmem:[#allocation1] sm:$0xff pattern:$0x75316420] }
 0x1bd   :  { %138 = vrot.lane.b32.xlu1 %v137_v46, %s903_s30 }
 0x1c5   :  { %182 = vrot.lane.b32.xlu1 %v125_v44, %s903_s30 }
 0x22f   :  { %v139_v47 = vpop.permute.xlu1 %138 }
 0x230   :  { %820 = vmatmul.msk.f32.vlgmr.msra.gmra.mxu2 %vm42_vm1, %v139_v47 }
 0x231   :  { %534 = vmatpush.msra.mxu2 %v932_v0 }
 0x233   :  { %535 = vmatpush.msra.mxu2 %v937_v1 }
 0x235   :  { %536 = vmatpush.msra.mxu2 %v944_v2 }
 0x237   :  { %537 = vmatpush.msra.mxu2 %v955_v4  ;;  %v183_v63 = vpop.permute.xlu1 %182 }
 0x239   :  { %538 = vmatpush.msra.mxu2 %v962_v5 }
 0x23b   :  { %539 = vmatpush.msra.mxu2 %v969_v6 }
 0x23d   :  { %540 = vmatpush.msra.mxu2 %v976_v7 }
 0x23f   :  { %541 = vmatpush.msra.mxu2 %v986_v9 }
 0x2b3   :  { %v159_v49 = vpop.f32.mrf.mxu2 }
 0x2b4   :  { %v162_v50 = vadd.f32 %v819_v48, %v159_v49  ;;  %v306_v49 = vrot.slane %v824_v30, 4 }
 0x2b6   :  { %v821_v51 = vmul.f32 -1.442695, %v162_v50 }
 0x2b8   :  { %861 = vpow2.f32 %v821_v51 }
 0x2be   :  { %v862_v52 = vpop.eup %861 }
 0x2bf   :  { %v166_v53 = vadd.f32 1.0, %v862_v52 }
 0x2c1   :  { %863 = vrcp.f32 %v166_v53  ;;  %v178_v57 = vand.u32 2147483648, %v166_v53  ;;  %v176_v59 = vand.u32 2147483647, %v166_v53  ;;  %vm172_vm7 = vweird.f32 %v166_v53 }
 0x2c3   :  { %v179_v61 = vor.u32 1.1754944e-38, %v178_v57  ;;  %vm177_vm9 = vcmp.eq.f32.partialorder %v176_v59, 8.507059e+37 }
 0x2c7   :  { %v864_v54 = vpop.eup %863 }
 0x2c8   :  { %v168_v55 = vmul.f32 %v864_v54, %v166_v53  ;;  %vm173_vm6 = vweird.f32 %v864_v54 }
 0x2c9   :  { %vm174_vm8 = vmor %vm172_vm7, %vm173_vm6 }
 0x2ca   :  { %v169_v56 = vsub.f32 1.0, %v168_v55 }
 0x2cc   :  { %v170_v58 = vmul.f32 %v864_v54, %v169_v56 }
 0x2ce   :  { %v171_v60 = vadd.f32 %v864_v54, %v170_v58 }
 0x2d0   :  { %v175_v62 = vsel %vm174_vm8, %v864_v54, %v171_v60 }
 0x2d1   :  { %v180_v3 = vsel %vm177_vm9, %v179_v61, %v175_v62  ;;  %v829_v61 = vld [vmem:[%s1272_s0 + $0x18] sm:$0xff] }
 0x2d2   :  { %v185_v8 = vmul.f32 %v183_v63, %v180_v3  ;;  %v215_v22 = vsub.f32 1.0, %v180_v3  ;;  %v214_v24 = vmul.f32 %v180_v3, %v125_v44 }
 0x2d4   :  { %822 = vmatmul.msk.f32.vlgmr.msra.gmra.mxu3 %vm42_vm1, %v185_v8 }
 0x2d5   :  { %581 = vmatpush.msra.mxu3 %v1022_v10 }
 0x2d7   :  { %582 = vmatpush.msra.mxu3 %v1027_v11 }
 0x2d9   :  { %583 = vmatpush.msra.mxu3 %v1034_v12 }
 0x2db   :  { %584 = vmatpush.msra.mxu3 %v1041_v13 }
 0x2dd   :  { %585 = vmatpush.msra.mxu3 %v1048_v14 }
 0x2df   :  { %586 = vmatpush.msra.mxu3 %v1055_v15 }
 0x2e1   :  { %587 = vmatpush.msra.mxu3 %v1062_v16 }
 0x2e3   :  { %588 = vmatpush.msra.mxu3 %v1074_v18 }
 0x357   :  { %v206_v19 = vpop.f32.mrf.mxu3 }
 0x358   :  { %v212_v20 = vadd.f32 %v210_v17, %v206_v19 }
 0x35a   :  { %865 = vtanh.f32 %v212_v20 }
 0x360   :  { %v866_v21 = vpop.eup %865 }
 0x361   :  { %217 = vrot.lane.b32.xlu2 %v866_v21, %s903_s30 }
 0x3bb   :  { %v218_v23 = vpop.permute.xlu2 %217 }
 0x3bc   :  { %v220_v25 = vmul.f32 %v218_v23, %v215_v22  ;;  %v402_v23 = vrot.slane %v829_v61, 4 }
 0x3be   :  { %v221_v26 = vadd.f32 %v220_v25, %v214_v24 }
 0x3c0   :  { %223 = vst [vmem:[#allocation1] ss:$2 sm:$0xff] %v221_v26  ;;  %278 = vrot.lane.b32.xlu0 %v221_v26, %s903_s30 }
 0x3c7   :  { %v1132_v27 = vld.sshfl [vmem:[#allocation1] sm:$0xff pattern:$0x75316420] }
 0x3c8   :  { %232 = vst [vmem:[#allocation1] ss:$2 sm:$0xff] %v221_v26 }
 0x3cf   :  { %v233_v28 = vld.sshfl [vmem:[#allocation1] sm:$0xff pattern:$0x75316420] }
 0x3d0   :  { %234 = vrot.lane.b32.xlu2 %v233_v28, %s903_s30 }
 0x42a   :  { %v235_v29 = vpop.permute.xlu2 %234 }
 0x42b   :  { %825 = vmatmul.msk.f32.vlgmr.msrb.gmra.mxu0 %vm42_vm1, %v235_v29 }
 0x42c   :  { %630 = vmatpush.msrb.mxu0 %v932_v0 }
 0x42e   :  { %631 = vmatpush.msrb.mxu0 %v937_v1 }
 0x430   :  { %632 = vmatpush.msrb.mxu0 %v944_v2 }
 0x432   :  { %633 = vmatpush.msrb.mxu0 %v955_v4  ;;  %v279_v46 = vpop.permute.xlu0 %278 }
 0x434   :  { %634 = vmatpush.msrb.mxu0 %v962_v5 }
 0x436   :  { %635 = vmatpush.msrb.mxu0 %v969_v6 }
 0x438   :  { %636 = vmatpush.msrb.mxu0 %v976_v7 }
 0x43a   :  { %637 = vmatpush.msrb.mxu0 %v986_v9 }
 0x4a8   :  { %v255_v31 = vpop.f32.mrf.mxu0 }
 0x4a9   :  { %v258_v32 = vadd.f32 %v824_v30, %v255_v31 }
 0x4ab   :  { %v826_v33 = vmul.f32 -1.442695, %v258_v32 }
 0x4ad   :  { %867 = vpow2.f32 %v826_v33 }
 0x4b3   :  { %v868_v34 = vpop.eup %867 }
 0x4b4   :  { %v262_v35 = vadd.f32 1.0, %v868_v34 }
 0x4b6   :  { %869 = vrcp.f32 %v262_v35  ;;  %v274_v39 = vand.u32 2147483648, %v262_v35  ;;  %v272_v41 = vand.u32 2147483647, %v262_v35  ;;  %vm268_vm11 = vweird.f32 %v262_v35 }
 0x4b8   :  { %v275_v43 = vor.u32 1.1754944e-38, %v274_v39  ;;  %vm273_vm13 = vcmp.eq.f32.partialorder %v272_v41, 8.507059e+37 }
 0x4bc   :  { %v870_v36 = vpop.eup %869 }
 0x4bd   :  { %v264_v37 = vmul.f32 %v870_v36, %v262_v35  ;;  %vm269_vm10 = vweird.f32 %v870_v36 }
 0x4be   :  { %vm270_vm12 = vmor %vm268_vm11, %vm269_vm10 }
 0x4bf   :  { %v265_v38 = vsub.f32 1.0, %v264_v37 }
 0x4c1   :  { %v266_v40 = vmul.f32 %v870_v36, %v265_v38 }
 0x4c3   :  { %v267_v42 = vadd.f32 %v870_v36, %v266_v40 }
 0x4c5   :  { %v271_v44 = vsel %vm270_vm12, %v870_v36, %v267_v42 }
 0x4c6   :  { %v276_v47 = vsel %vm273_vm13, %v275_v43, %v271_v44 }
 0x4c7   :  { %v281_v48 = vmul.f32 %v279_v46, %v276_v47  ;;  %v311_v53 = vsub.f32 1.0, %v276_v47  ;;  %v310_v55 = vmul.f32 %v276_v47, %v221_v26 }
 0x4c9   :  { %827 = vmatmul.msk.f32.vlgmr.msrb.gmra.mxu1 %vm42_vm1, %v281_v48 }
 0x4ca   :  { %677 = vmatpush.msrb.mxu1 %v1022_v10 }
 0x4cc   :  { %678 = vmatpush.msrb.mxu1 %v1027_v11 }
 0x4ce   :  { %679 = vmatpush.msrb.mxu1 %v1034_v12 }
 0x4d0   :  { %680 = vmatpush.msrb.mxu1 %v1041_v13 }
 0x4d2   :  { %681 = vmatpush.msrb.mxu1 %v1048_v14 }
 0x4d4   :  { %682 = vmatpush.msrb.mxu1 %v1055_v15 }
 0x4d6   :  { %683 = vmatpush.msrb.mxu1 %v1062_v16 }
 0x4d8   :  { %684 = vmatpush.msrb.mxu1 %v1074_v18 }
 0x546   :  { %v302_v50 = vpop.f32.mrf.mxu1 }
 0x547   :  { %v308_v51 = vadd.f32 %v306_v49, %v302_v50 }
 0x549   :  { %871 = vtanh.f32 %v308_v51 }
 0x54f   :  { %v872_v52 = vpop.eup %871 }
 0x550   :  { %313 = vrot.lane.b32.xlu1 %v872_v52, %s903_s30 }
 0x5c2   :  { %v314_v54 = vpop.permute.xlu1 %313 }
 0x5c3   :  { %v316_v56 = vmul.f32 %v314_v54, %v311_v53 }
 0x5c5   :  { %v317_v57 = vadd.f32 %v316_v56, %v310_v55 }
 0x5c7   :  { %319 = vst [vmem:[#allocation1] ss:$2 sm:$0xff] %v317_v57  ;;  %374 = vrot.lane.b32.xlu0 %v317_v57, %s903_s30 }
 0x5ce   :  { %v1158_v58 = vld.sshfl [vmem:[#allocation1] sm:$0xff pattern:$0x75316420] }
 0x5cf   :  { %328 = vst [vmem:[#allocation1] ss:$2 sm:$0xff] %v317_v57 }
 0x5d6   :  { %v329_v59 = vld.sshfl [vmem:[#allocation1] sm:$0xff pattern:$0x75316420] }
 0x5d7   :  { %330 = vrot.lane.b32.xlu2 %v329_v59, %s903_s30 }
 0x631   :  { %v331_v60 = vpop.permute.xlu2 %330 }
 0x632   :  { %830 = vmatmul.msk.f32.vlgmr.msrb.gmra.mxu2 %vm42_vm1, %v331_v60  ;;  %v839_v60 = vld [vmem:[%s1272_s0 + $0x28] sm:$0xff] }
 0x633   :  { %726 = vmatpush.msrb.mxu2 %v932_v0 }
 0x635   :  { %727 = vmatpush.msrb.mxu2 %v937_v1 }
 0x637   :  { %728 = vmatpush.msrb.mxu2 %v944_v2 }
 0x639   :  { %729 = vmatpush.msrb.mxu2 %v955_v4  ;;  %v375_v20 = vpop.permute.xlu0 %374 }
 0x63b   :  { %730 = vmatpush.msrb.mxu2 %v962_v5 }
 0x63d   :  { %731 = vmatpush.msrb.mxu2 %v969_v6 }
 0x63f   :  { %732 = vmatpush.msrb.mxu2 %v976_v7 }
 0x641   :  { %733 = vmatpush.msrb.mxu2 %v986_v9 }
 0x6b5   :  { %v351_v62 = vpop.f32.mrf.mxu2 }
 0x6b6   :  { %v354_v0 = vadd.f32 %v829_v61, %v351_v62 }
 0x6b8   :  { %v831_v63 = vmul.f32 -1.442695, %v354_v0 }
 0x6ba   :  { %873 = vpow2.f32 %v831_v63 }
 0x6c0   :  { %v874_v1 = vpop.eup %873 }
 0x6c1   :  { %v358_v2 = vadd.f32 1.0, %v874_v1 }
 0x6c3   :  { %875 = vrcp.f32 %v358_v2  ;;  %v370_v8 = vand.u32 2147483648, %v358_v2  ;;  %v368_v7 = vand.u32 2147483647, %v358_v2  ;;  %vm364_vm15 = vweird.f32 %v358_v2 }
 0x6c5   :  { %v371_v9 = vor.u32 1.1754944e-38, %v370_v8  ;;  %vm369_vm3 = vcmp.eq.f32.partialorder %v368_v7, 8.507059e+37 }
 0x6c9   :  { %v876_v4 = vpop.eup %875 }
 0x6ca   :  { %v360_v3 = vmul.f32 %v876_v4, %v358_v2  ;;  %vm365_vm14 = vweird.f32 %v876_v4 }
 0x6cb   :  { %vm366_vm2 = vmor %vm364_vm15, %vm365_vm14 }
 0x6cc   :  { %v361_v5 = vsub.f32 1.0, %v360_v3 }
 0x6ce   :  { %v362_v6 = vmul.f32 %v876_v4, %v361_v5 }
 0x6d0   :  { %v363_v17 = vadd.f32 %v876_v4, %v362_v6 }
 0x6d2   :  { %v367_v19 = vsel %vm366_vm2, %v876_v4, %v363_v17 }
 0x6d3   :  { %v372_v21 = vsel %vm369_vm3, %v371_v9, %v367_v19 }
 0x6d4   :  { %v377_v22 = vmul.f32 %v375_v20, %v372_v21 }
 0x6d6   :  { %832 = vmatmul.msk.f32.vlgmr.msrb.gmra.mxu3 %vm42_vm1, %v377_v22  ;;  %v594_v22 = vrot.slane %v839_v60, 4 }
 0x6d7   :  { %773 = vmatpush.msrb.mxu3 %v1022_v10  ;;  %v407_v10 = vsub.f32 1.0, %v372_v21 }
 0x6d9   :  { %774 = vmatpush.msrb.mxu3 %v1027_v11 }
 0x6db   :  { %775 = vmatpush.msrb.mxu3 %v1034_v12  ;;  %v406_v12 = vmul.f32 %v372_v21, %v317_v57 }
 0x6dd   :  { %776 = vmatpush.msrb.mxu3 %v1041_v13 }
 0x6df   :  { %777 = vmatpush.msrb.mxu3 %v1048_v14 }
 0x6e1   :  { %778 = vmatpush.msrb.mxu3 %v1055_v15 }
 0x6e3   :  { %779 = vmatpush.msrb.mxu3 %v1062_v16 }
 0x6e5   :  { %780 = vmatpush.msrb.mxu3 %v1074_v18  ;;  %v834_v18 = vld [vmem:[%s1272_s0 + $0x20] sm:$0xff] }
 0x6e6   :  { %v498_v47 = vrot.slane %v834_v18, 4 }
 0x759   :  { %v398_v24 = vpop.f32.mrf.mxu3 }
 0x75a   :  { %v404_v25 = vadd.f32 %v402_v23, %v398_v24 }
 0x75c   :  { %877 = vtanh.f32 %v404_v25 }
 0x762   :  { %v878_v26 = vpop.eup %877 }
 0x763   :  { %409 = vrot.lane.b32.xlu1 %v878_v26, %s903_s30 }
 0x7d5   :  { %v410_v11 = vpop.permute.xlu1 %409 }
 0x7d6   :  { %v412_v28 = vmul.f32 %v410_v11, %v407_v10 }
 0x7d8   :  { %v413_v13 = vadd.f32 %v412_v28, %v406_v12 }
 0x7da   :  { %415 = vst [vmem:[#allocation1] ss:$2 sm:$0xff] %v413_v13  ;;  %470 = vrot.lane.b32.xlu0 %v413_v13, %s903_s30 }
 0x7e1   :  { %v1184_v14 = vld.sshfl [vmem:[#allocation1] sm:$0xff pattern:$0x75316420] }
 0x7e2   :  { %424 = vst [vmem:[#allocation1] ss:$2 sm:$0xff] %v413_v13 }
 0x7e9   :  { %v425_v15 = vld.sshfl [vmem:[#allocation1] sm:$0xff pattern:$0x75316420] }
 0x7ea   :  { %426 = vrot.lane.b32.xlu2 %v425_v15, %s903_s30 }
 0x844   :  { %v427_v16 = vpop.permute.xlu2 %426 }
 0x845   :  { %835 = vmatmul.msk.f32.vlgmr.msra.gmra.mxu0 %vm42_vm1, %v427_v16 }
 0x84c   :  { %v471_v43 = vpop.permute.xlu0 %470 }
 0x8c2   :  { %v447_v29 = vpop.f32.mrf.mxu0 }
 0x8c3   :  { %v450_v30 = vadd.f32 %v834_v18, %v447_v29  ;;  %v844_v18 = vld [vmem:[%s1272_s0 + $0x30] sm:$0xff] }
 0x8c5   :  { %v836_v31 = vmul.f32 -1.442695, %v450_v30 }
 0x8c7   :  { %879 = vpow2.f32 %v836_v31 }
 0x8cd   :  { %v880_v32 = vpop.eup %879 }
 0x8ce   :  { %v454_v33 = vadd.f32 1.0, %v880_v32 }
 0x8d0   :  { %881 = vrcp.f32 %v454_v33  ;;  %v466_v37 = vand.u32 2147483648, %v454_v33  ;;  %v464_v39 = vand.u32 2147483647, %v454_v33  ;;  %vm460_vm5 = vweird.f32 %v454_v33 }
 0x8d2   :  { %v467_v41 = vor.u32 1.1754944e-38, %v466_v37  ;;  %vm465_vm7 = vcmp.eq.f32.partialorder %v464_v39, 8.507059e+37 }
 0x8d6   :  { %v882_v34 = vpop.eup %881 }
 0x8d7   :  { %v456_v35 = vmul.f32 %v882_v34, %v454_v33  ;;  %vm461_vm4 = vweird.f32 %v882_v34 }
 0x8d8   :  { %vm462_vm6 = vmor %vm460_vm5, %vm461_vm4 }
 0x8d9   :  { %v457_v36 = vsub.f32 1.0, %v456_v35 }
 0x8db   :  { %v458_v38 = vmul.f32 %v882_v34, %v457_v36 }
 0x8dd   :  { %v459_v40 = vadd.f32 %v882_v34, %v458_v38 }
 0x8df   :  { %v463_v42 = vsel %vm462_vm6, %v882_v34, %v459_v40 }
 0x8e0   :  { %v468_v44 = vsel %vm465_vm7, %v467_v41, %v463_v42 }
 0x8e1   :  { %v473_v46 = vmul.f32 %v471_v43, %v468_v44  ;;  %v503_v51 = vsub.f32 1.0, %v468_v44  ;;  %v502_v53 = vmul.f32 %v468_v44, %v413_v13 }
 0x8e3   :  { %837 = vmatmul.msk.f32.vlgmr.msra.gmra.mxu1 %vm42_vm1, %v473_v46 }
 0x960   :  { %v494_v48 = vpop.f32.mrf.mxu1 }
 0x961   :  { %v500_v49 = vadd.f32 %v498_v47, %v494_v48  ;;  %v690_v47 = vrot.slane %v844_v18, 4 }
 0x963   :  { %883 = vtanh.f32 %v500_v49 }
 0x969   :  { %v884_v50 = vpop.eup %883 }
 0x96a   :  { %505 = vrot.lane.b32.xlu1 %v884_v50, %s903_s30 }
 0x9dc   :  { %v506_v52 = vpop.permute.xlu1 %505 }
 0x9dd   :  { %v508_v54 = vmul.f32 %v506_v52, %v503_v51 }
 0x9df   :  { %v509_v55 = vadd.f32 %v508_v54, %v502_v53 }
 0x9e1   :  { %511 = vst [vmem:[#allocation1] ss:$2 sm:$0xff] %v509_v55  ;;  %566 = vrot.lane.b32.xlu0 %v509_v55, %s903_s30 }
 0x9e8   :  { %v1194_v56 = vld.sshfl [vmem:[#allocation1] sm:$0xff pattern:$0x75316420] }
 0x9e9   :  { %520 = vst [vmem:[#allocation1] ss:$2 sm:$0xff] %v509_v55 }
 0x9f0   :  { %v521_v57 = vld.sshfl [vmem:[#allocation1] sm:$0xff pattern:$0x75316420] }
 0x9f1   :  { %522 = vrot.lane.b32.xlu2 %v521_v57, %s903_s30 }
 0xa4b   :  { %v523_v59 = vpop.permute.xlu2 %522 }
 0xa4c   :  { %840 = vmatmul.msk.f32.vlgmr.msra.gmra.mxu2 %vm42_vm1, %v523_v59 }
 0xa53   :  { %v567_v19 = vpop.permute.xlu0 %566 }
 0xacf   :  { %v543_v61 = vpop.f32.mrf.mxu2 }
 0xad0   :  { %v546_v62 = vadd.f32 %v839_v60, %v543_v61 }
 0xad2   :  { %v841_v0 = vmul.f32 -1.442695, %v546_v62 }
 0xad4   :  { %885 = vpow2.f32 %v841_v0  ;;  %v849_v0 = vld [vmem:[%s1272_s0 + $0x38] sm:$0xff] }
 0xada   :  { %v886_v63 = vpop.eup %885 }
 0xadb   :  { %v550_v1 = vadd.f32 1.0, %v886_v63 }
 0xadd   :  { %887 = vrcp.f32 %v550_v1  ;;  %v562_v5 = vand.u32 2147483648, %v550_v1  ;;  %v560_v6 = vand.u32 2147483647, %v550_v1  ;;  %vm556_vm9 = vweird.f32 %v550_v1 }
 0xadf   :  { %v563_v17 = vor.u32 1.1754944e-38, %v562_v5  ;;  %vm561_vm11 = vcmp.eq.f32.partialorder %v560_v6, 8.507059e+37 }
 0xae3   :  { %v888_v2 = vpop.eup %887 }
 0xae4   :  { %v552_v4 = vmul.f32 %v888_v2, %v550_v1  ;;  %vm557_vm8 = vweird.f32 %v888_v2 }
 0xae5   :  { %vm558_vm10 = vmor %vm556_vm9, %vm557_vm8 }
 0xae6   :  { %v553_v3 = vsub.f32 1.0, %v552_v4 }
 0xae8   :  { %v554_v8 = vmul.f32 %v888_v2, %v553_v3 }
 0xaea   :  { %v555_v7 = vadd.f32 %v888_v2, %v554_v8 }
 0xaec   :  { %v559_v9 = vsel %vm558_vm10, %v888_v2, %v555_v7 }
 0xaed   :  { %v564_v20 = vsel %vm561_vm11, %v563_v17, %v559_v9 }
 0xaee   :  { %v569_v21 = vmul.f32 %v567_v19, %v564_v20  ;;  %v599_v26 = vsub.f32 1.0, %v564_v20  ;;  %v598_v11 = vmul.f32 %v564_v20, %v509_v55 }
 0xaf0   :  { %842 = vmatmul.msk.f32.vlgmr.msra.gmra.mxu3 %vm42_vm1, %v569_v21 }
 0xb73   :  { %v590_v23 = vpop.f32.mrf.mxu3 }
 0xb74   :  { %v596_v24 = vadd.f32 %v594_v22, %v590_v23 }
 0xb76   :  { %889 = vtanh.f32 %v596_v24  ;;  %v786_v24 = vrot.slane %v849_v0, 4 }
 0xb7c   :  { %v890_v25 = vpop.eup %889 }
 0xb7d   :  { %601 = vrot.lane.b32.xlu1 %v890_v25, %s903_s30 }
 0xbef   :  { %v602_v10 = vpop.permute.xlu1 %601 }
 0xbf0   :  { %v604_v12 = vmul.f32 %v602_v10, %v599_v26 }
 0xbf2   :  { %v605_v28 = vadd.f32 %v604_v12, %v598_v11 }
 0xbf4   :  { %607 = vst [vmem:[#allocation1] ss:$2 sm:$0xff] %v605_v28  ;;  %662 = vrot.lane.b32.xlu0 %v605_v28, %s903_s30 }
 0xbfb   :  { %v1204_v13 = vld.sshfl [vmem:[#allocation1] sm:$0xff pattern:$0x75316420] }
 0xbfc   :  { %616 = vst [vmem:[#allocation1] ss:$2 sm:$0xff] %v605_v28 }
 0xc03   :  { %v617_v15 = vld.sshfl [vmem:[#allocation1] sm:$0xff pattern:$0x75316420] }
 0xc04   :  { %618 = vrot.lane.b32.xlu2 %v617_v15, %s903_s30 }
 0xc5e   :  { %v619_v16 = vpop.permute.xlu2 %618 }
 0xc5f   :  { %845 = vmatmul.msk.f32.vlgmr.msrb.gmra.mxu0 %vm42_vm1, %v619_v16 }
 0xc66   :  { %v663_v43 = vpop.permute.xlu0 %662 }
 0xcdc   :  { %v639_v29 = vpop.f32.mrf.mxu0 }
 0xcdd   :  { %v642_v30 = vadd.f32 %v844_v18, %v639_v29 }
 0xcdf   :  { %v846_v31 = vmul.f32 -1.442695, %v642_v30 }
 0xce1   :  { %891 = vpow2.f32 %v846_v31 }
 0xce7   :  { %v892_v32 = vpop.eup %891 }
 0xce8   :  { %v646_v33 = vadd.f32 1.0, %v892_v32 }
 0xcea   :  { %893 = vrcp.f32 %v646_v33  ;;  %v658_v37 = vand.u32 2147483648, %v646_v33  ;;  %v656_v39 = vand.u32 2147483647, %v646_v33  ;;  %vm652_vm13 = vweird.f32 %v646_v33 }
 0xcec   :  { %v659_v41 = vor.u32 1.1754944e-38, %v658_v37  ;;  %vm657_vm15 = vcmp.eq.f32.partialorder %v656_v39, 8.507059e+37 }
 0xcf0   :  { %v894_v34 = vpop.eup %893 }
 0xcf1   :  { %v648_v35 = vmul.f32 %v894_v34, %v646_v33  ;;  %vm653_vm12 = vweird.f32 %v894_v34 }
 0xcf2   :  { %vm654_vm14 = vmor %vm652_vm13, %vm653_vm12 }
 0xcf3   :  { %v649_v36 = vsub.f32 1.0, %v648_v35 }
 0xcf5   :  { %v650_v38 = vmul.f32 %v894_v34, %v649_v36 }
 0xcf7   :  { %v651_v40 = vadd.f32 %v894_v34, %v650_v38 }
 0xcf9   :  { %v655_v42 = vsel %vm654_vm14, %v894_v34, %v651_v40 }
 0xcfa   :  { %v660_v44 = vsel %vm657_vm15, %v659_v41, %v655_v42 }
 0xcfb   :  { %v665_v46 = vmul.f32 %v663_v43, %v660_v44  ;;  %v695_v51 = vsub.f32 1.0, %v660_v44  ;;  %v694_v53 = vmul.f32 %v660_v44, %v605_v28 }
 0xcfd   :  { %847 = vmatmul.msk.f32.vlgmr.msrb.gmra.mxu1 %vm42_vm1, %v665_v46 }
 0xd7a   :  { %v686_v48 = vpop.f32.mrf.mxu1 }
 0xd7b   :  { %v692_v49 = vadd.f32 %v690_v47, %v686_v48 }
 0xd7d   :  { %895 = vtanh.f32 %v692_v49 }
 0xd83   :  { %v896_v50 = vpop.eup %895 }
 0xd84   :  { %697 = vrot.lane.b32.xlu1 %v896_v50, %s903_s30 }
 0xdf6   :  { %v698_v52 = vpop.permute.xlu1 %697 }
 0xdf7   :  { %v700_v54 = vmul.f32 %v698_v52, %v695_v51 }
 0xdf9   :  { %v701_v55 = vadd.f32 %v700_v54, %v694_v53 }
 0xdfb   :  { %703 = vst [vmem:[#allocation1] ss:$2 sm:$0xff] %v701_v55  ;;  %758 = vrot.lane.b32.xlu0 %v701_v55, %s903_s30 }
 0xe02   :  { %v704_v57 = vld.sshfl [vmem:[#allocation1] sm:$0xff pattern:$0x75316420] }
 0xe03   :  { %225 = vrot.lane.b32.xlu0 %v1132_v27, %s903_s30  ;;  %712 = vst [vmem:[#allocation1] ss:$2 sm:$0xff] %v701_v55 }
 0xe0a   :  { %v713_v59 = vld.sshfl [vmem:[#allocation1] sm:$0xff pattern:$0x75316420] }
 0xe0b   :  { %513 = vrot.lane.b32.xlu0 %v1194_v56, %s903_s30  ;;  %714 = vrot.lane.b32.xlu2 %v713_v59, %s903_s30 }
 0xe13   :  { %129 = vrot.lane.b32.xlu2 %v1105_v45, %s903_s30 }
 0xe1b   :  { %417 = vrot.lane.b32.xlu2 %v1184_v14, %s903_s30 }
 0xe23   :  { %705 = vrot.lane.b32.xlu2 %v704_v57, %s903_s30 }
 0xe65   :  { %v715_v60 = vpop.permute.xlu2 %714 }
 0xe66   :  { %850 = vmatmul.msk.f32.vlgmr.msrb.gmra.mxu2 %vm42_vm1, %v715_v60 }
 0xe6d   :  { %v759_v61 = vpop.permute.xlu0 %758  ;;  %v130_v27 = vpop.permute.xlu2 %129 }
 0xe6e   :  { %133 = vst.msk [vmem:[%s1273_s4] sm:$0xf] %vm22_vm0, %v130_v27 }
 0xe75   :  { %v226_v56 = vpop.permute.xlu0 %225  ;;  %v418_v62 = vpop.permute.xlu2 %417 }
 0xe76   :  { %823 = vst.msk [vmem:[%s1273_s4 + $0x4] sm:$0xf] %vm22_vm0, %v226_v56 }
 0xe77   :  { %833 = vst.msk [vmem:[%s1273_s4 + $0xc] sm:$0xf] %vm22_vm0, %v418_v62 }
 0xe7d   :  { %v514_v45 = vpop.permute.xlu0 %513  ;;  %v706_v14 = vpop.permute.xlu2 %705 }
 0xe7e   :  { %838 = vst.msk [vmem:[%s1273_s4 + $0x10] sm:$0xf] %vm22_vm0, %v514_v45 }
 0xe7f   :  { %848 = vst.msk [vmem:[%s1273_s4 + $0x18] sm:$0xf] %vm22_vm0, %v706_v14 }
 0xee9   :  { %v735_v63 = vpop.f32.mrf.mxu2 }
 0xeea   :  { %v738_v1 = vadd.f32 %v849_v0, %v735_v63 }
 0xeec   :  { %v851_v2 = vmul.f32 -1.442695, %v738_v1 }
 0xeee   :  { %897 = vpow2.f32 %v851_v2 }
 0xef4   :  { %v898_v4 = vpop.eup %897 }
 0xef5   :  { %v742_v3 = vadd.f32 1.0, %v898_v4 }
 0xef7   :  { %899 = vrcp.f32 %v742_v3  ;;  %v754_v7 = vand.u32 2147483648, %v742_v3  ;;  %v752_v9 = vand.u32 2147483647, %v742_v3  ;;  %vm748_vm3 = vweird.f32 %v742_v3 }
 0xef9   :  { %v755_v20 = vor.u32 1.1754944e-38, %v754_v7  ;;  %vm753_vm5 = vcmp.eq.f32.partialorder %v752_v9, 8.507059e+37 }
 0xefd   :  { %v900_v5 = vpop.eup %899 }
 0xefe   :  { %v744_v8 = vmul.f32 %v900_v5, %v742_v3  ;;  %vm749_vm2 = vweird.f32 %v900_v5 }
 0xeff   :  { %vm750_vm4 = vmor %vm748_vm3, %vm749_vm2 }
 0xf00   :  { %v745_v6 = vsub.f32 1.0, %v744_v8 }
 0xf02   :  { %v746_v17 = vmul.f32 %v900_v5, %v745_v6 }
 0xf04   :  { %v747_v19 = vadd.f32 %v900_v5, %v746_v17 }
 0xf06   :  { %v751_v21 = vsel %vm750_vm4, %v900_v5, %v747_v19 }
 0xf07   :  { %v756_v22 = vsel %vm753_vm5, %v755_v20, %v751_v21 }
 0xf08   :  { %v761_v23 = vmul.f32 %v759_v61, %v756_v22  ;;  %v791_v11 = vsub.f32 1.0, %v756_v22  ;;  %v790_v28 = vmul.f32 %v756_v22, %v701_v55 }
 0xf0a   :  { %852 = vmatmul.msk.f32.vlgmr.msrb.gmra.mxu3 %vm42_vm1, %v761_v23 }
 0xf8d   :  { %v782_v25 = vpop.f32.mrf.mxu3 }
 0xf8e   :  { %v788_v26 = vadd.f32 %v786_v24, %v782_v25 }
 0xf90   :  { %901 = vtanh.f32 %v788_v26 }
 0xf96   :  { %v902_v10 = vpop.eup %901 }
 0xf97   :  { %793 = vrot.lane.b32.xlu1 %v902_v10, %s903_s30 }
 0xf9f   :  { %321 = vrot.lane.b32.xlu1 %v1158_v58, %s903_s30 }
 0xfa7   :  { %609 = vrot.lane.b32.xlu1 %v1204_v13, %s903_s30 }
0x1009   :  { %v794_v12 = vpop.permute.xlu1 %793 }
0x100a   :  { %v796_v15 = vmul.f32 %v794_v12, %v791_v11 }
0x100c   :  { %v797_v16 = vadd.f32 %v796_v15, %v790_v28 }
0x100e   :  { %799 = vst [vmem:[#allocation1] ss:$2 sm:$0xff] %v797_v16 }
0x1011   :  { %v322_v18 = vpop.permute.xlu1 %321 }
0x1012   :  { %828 = vst.msk [vmem:[%s1273_s4 + $0x8] sm:$0xf] %vm22_vm0, %v322_v18 }
0x1015   :  { %v800_v29 = vld.sshfl [vmem:[#allocation1] sm:$0xff pattern:$0x75316420] }
0x1016   :  { %801 = vrot.lane.b32.xlu0 %v800_v29, %s903_s30  ;;  %806 = vst [vmem:[#allocation1] ss:$2 sm:$0xff] %v797_v16 }
0x1019   :  { %v610_v58 = vpop.permute.xlu1 %609 }
0x101a   :  { %843 = vst.msk [vmem:[%s1273_s4 + $0x14] sm:$0xf] %vm22_vm0, %v610_v58 }
0x101d   :  { %v807_v13 = vld.sshfl [vmem:[#allocation1] sm:$0xff pattern:$0x75316420] }
0x101e   :  { %808 = vrot.lane.b32.xlu1 %v807_v13, %s903_s30 }
0x1088   :  { %v802_v30 = vpop.permute.xlu0 %801 }
0x1089   :  { %853 = vst.msk [vmem:[%s1273_s4 + $0x1c] sm:$0xf] %vm22_vm0, %v802_v30 }
0x1090   :  { %v809_v31 = vpop.permute.xlu1 %808 }
0x1091   :  { %811 = vst.msk [vmem:[#allocation2] sm:$0xf] %vm22_vm0, %v809_v31 }

</bundles_post_ra>
